<compile_context>
chip_gen: v5e
topology: v5e:2x2
jax: 0.10.0
libtpu: 0.0.40
codegen_flags: <defaults>
</compile_context>

<pallas_src>
import math

import jax
import jax.numpy as jnp
from jax.experimental import pallas as pl
from jax.experimental.pallas import tpu as pltpu


def _make_rope_kernel(block_rows: int, pack: int, dim: int):
    half = dim // 2

    def kernel(tab_ref, out_ref):
        # tab_ref: (2, pack*half) f32
        #   row 0: inv_freq[lane % half]
        #   row 1: lane // half   (packed sub-row offset, exact small integer)
        # out_ref: (block_rows, pack*dim)
        inv = tab_ref[0:1, :]                                   # (1, gw)
        koff = tab_ref[1:2, :]                                  # (1, gw)

        base = (pl.program_id(0) * (block_rows * pack)).astype(jnp.float32)
        row = jax.lax.broadcasted_iota(jnp.int32, (block_rows, 1), 0).astype(jnp.float32)
        pos0 = base + row * jnp.float32(pack)                   # (block_rows, 1) exact ints

        # One angle per output element, grouped sub-row-major so the lane axis is dense.
        # (pos0 + koff) is an exact integer; a single rounding in the multiply matches
        # the reference pos * inv_freq bit-for-bit.
        s = (pos0 + koff) * inv                                 # (block_rows, gw)
        sin_all = jnp.sin(s)                                    # one trig per element
        cos_all = jnp.cos(s)

        for k in range(pack):                                   # small static unroll
            src = slice(k * half, (k + 1) * half)
            out_ref[:, k * dim : k * dim + half] = sin_all[:, src].astype(out_ref.dtype)
            out_ref[:, k * dim + half : (k + 1) * dim] = cos_all[:, src].astype(out_ref.dtype)

    return kernel


def rotary_positional_encoding(seq_len: int, dim: int, *,
                               out_dtype=jnp.float32,
                               tile_bytes: int = 2 << 20):
    """Pallas-TPU equivalent of RotaryPositionalEncoding(dim).forward(seq_len)."""
    assert dim % 2 == 0, "Embedding dimension must be even for RoPE."
    half = dim // 2

    # Lane-dense packing: fold `pack` consecutive sequence rows into one output row so
    # that the compute width pack*half (and hence the output row pack*dim) is a
    # multiple of 128 lanes.  Prefer the half-based lcm; fall back to the dim-based
    # one, then to no packing, when seq_len is not divisible.
    pack = 1
    for cand in (math.lcm(half, 128) // half, math.lcm(dim, 128) // dim):
        if cand <= 32 and seq_len % cand == 0:
            pack = cand
            break
    packed_rows = seq_len // pack
    packed_dim = pack * dim
    gw = pack * half                                            # grouped compute width

    # Per-lane constants (built once outside the kernel; block-index-constant input).
    inv_freq = 1.0 / (10000.0 ** (jnp.arange(0, dim, 2, dtype=jnp.float32) / dim))
    inv_lane = jnp.tile(inv_freq, pack)                         # inv_freq[lane % half]
    koff_lane = jnp.repeat(jnp.arange(pack, dtype=jnp.float32), half)   # lane // half
    tab = jnp.stack([inv_lane, koff_lane], axis=0)              # (2, gw) f32

    # Tile sizing: ~tile_bytes of output per step (double-buffered) + ~1.5x tile of f32
    # intermediates (s / sin / cos) stays well under default scoped VMEM on all
    # generations.  No artificial minimum step count: single-TC v5e/v6e want the fewest
    # steps possible; big tables still yield many steps for v7x megacore sharding.
    itemsize = jnp.dtype(out_dtype).itemsize
    sublane = {4: 8, 2: 16, 1: 32}.get(itemsize, 8)
    rows_cap = max(sublane, tile_bytes // max(1, packed_dim * itemsize))
    block_rows = min(packed_rows, rows_cap)
    if block_rows < packed_rows:
        block_rows = max(sublane, (block_rows // sublane) * sublane)
    grid = (pl.cdiv(packed_rows, block_rows),)

    emb_packed = pl.pallas_call(
        _make_rope_kernel(block_rows, pack, dim),
        out_shape=jax.ShapeDtypeStruct((packed_rows, packed_dim), out_dtype),
        grid_spec=pltpu.PrefetchScalarGridSpec(
            num_scalar_prefetch=0,
            grid=grid,
            in_specs=[pl.BlockSpec((2, gw), lambda i: (0, 0))],
            out_specs=pl.BlockSpec((block_rows, packed_dim), lambda i: (i, 0)),
        ),
        compiler_params=pltpu.CompilerParams(
            dimension_semantics=("parallel",),
        ),
    )(tab)

    # Row-major metadata reshape back to (seq_len, dim) — no extra HBM traffic.
    return emb_packed.reshape(seq_len, dim)


def _reference(seq_len: int, dim: int):
    inv_freq = 1.0 / (10000.0 ** (jnp.arange(0, dim, 2, dtype=jnp.float32) / dim))
    pos = jnp.arange(seq_len, dtype=jnp.float32)
    s = jnp.einsum("i,j->ij", pos, inv_freq)
    return jnp.concatenate([jnp.sin(s), jnp.cos(s)], axis=-1)


if __name__ == "__main__":
    _ = jax.random.PRNGKey(0)  # module has no random parameters; kept for deterministic setup

    # 1) Small packed case: seq_len=8, dim=32 -> pack=8, packed_dim=256 (lane-dense).
    seq_len, dim = 8, 32
    emb = jax.block_until_ready(rotary_positional_encoding(seq_len, dim))
    assert emb.shape == (seq_len, dim) and emb.dtype == jnp.float32
    assert jnp.allclose(emb, _reference(seq_len, dim), atol=1e-5, rtol=1e-5), "packed dim=32"

    # 2) Non-power-of-two dim, packed path: seq_len=16, dim=48 -> pack=16.
    emb2 = jax.block_until_ready(rotary_positional_encoding(16, 48))
    assert emb2.shape == (16, 48)
    assert jnp.allclose(emb2, _reference(16, 48), atol=1e-5, rtol=1e-5), "packed dim=48"

    # 3) Fallback (unpacked, lane-sparse) path: seq_len not divisible by pack.
    emb3 = jax.block_until_ready(rotary_positional_encoding(12, 48))
    assert emb3.shape == (12, 48)
    assert jnp.allclose(emb3, _reference(12, 48), atol=1e-5, rtol=1e-5), "fallback dim=48"

    # 4) Wide-dim path (half >= 128, pack=1, aligned full-width stores).
    emb4 = jax.block_until_ready(rotary_positional_encoding(8, 256))
    assert emb4.shape == (8, 256)
    assert jnp.allclose(emb4, _reference(8, 256), atol=1e-5, rtol=1e-5), "wide dim=256"

    # 5) Multi-step + ragged last block (tiny tile budget forces grid > 1).
    emb5 = jax.block_until_ready(rotary_positional_encoding(80, 32, tile_bytes=1024))
    assert emb5.shape == (80, 32)
    assert jnp.allclose(emb5, _reference(80, 32), atol=1e-5, rtol=1e-5), "ragged multi-step"

    print("KERNEL_OK")
</pallas_src>

<mosaic_0001>
module attributes {stable_mosaic.version = 11 : i64} {
  func.func @kernel(%arg0: i32, %arg1: memref<2x128xf32, #tpu.memory_space<vmem>>, %arg2: memref<1x256xf32, #tpu.memory_space<vmem>>) attributes {dimension_semantics = [#tpu.dimension_semantics<parallel>], iteration_bounds = array<i64: 1>, scalar_prefetch = 0 : i64, scratch_operands = 0 : i64, tpu.core_type = #tpu.core_type<tc>, window_params = [{pipeline_mode = #tpu.pipeline_mode<synchronous>, transform_indices = @transform_0, window_bounds = array<i64: 2, 128>}, {transform_indices = @transform_1, window_bounds = array<i64: 1, 256>}]} {
    %c0 = arith.constant 0 : index
    %c0_0 = arith.constant 0 : index
    %0 = vector.load %arg1[%c0, %c0_0] : memref<2x128xf32, #tpu.memory_space<vmem>>, vector<1x128xf32>
    %c1 = arith.constant 1 : index
    %c0_1 = arith.constant 0 : index
    %1 = vector.load %arg1[%c1, %c0_1] : memref<2x128xf32, #tpu.memory_space<vmem>>, vector<1x128xf32>
    %c8_i32 = arith.constant 8 : i32
    %2 = arith.muli %arg0, %c8_i32 : i32
    %3 = arith.sitofp %2 : i32 to f32
    %4 = tpu.iota {dimensions = array<i32: 0>} : vector<1x1xi32>
    %5 = arith.sitofp %4 : vector<1x1xi32> to vector<1x1xf32>
    %cst = arith.constant 8.000000e+00 : f32
    %6 = vector.broadcast %cst : f32 to vector<1x1xf32>
    %7 = arith.mulf %5, %6 : vector<1x1xf32>
    %8 = vector.broadcast %3 : f32 to vector<1x1xf32>
    %9 = arith.addf %8, %7 : vector<1x1xf32>
    %10 = vector.broadcast %9 : vector<1x1xf32> to vector<1x128xf32>
    %11 = arith.addf %10, %1 : vector<1x128xf32>
    %12 = arith.mulf %11, %0 : vector<1x128xf32>
    %13 = math.sin %12 : vector<1x128xf32>
    %14 = math.cos %12 : vector<1x128xf32>
    %15 = vector.extract_strided_slice %13 {offsets = [0, 0], sizes = [1, 16], strides = [1, 1]} : vector<1x128xf32> to vector<1x16xf32>
    %c0_2 = arith.constant 0 : index
    %c0_3 = arith.constant 0 : index
    %16 = vector.load %arg2[%c0_2, %c0_3] : memref<1x256xf32, #tpu.memory_space<vmem>>, vector<1x16xf32>
    tpu.vector_store %arg2[%c0_2, %c0_3], %15 {strides = array<i32>} : memref<1x256xf32, #tpu.memory_space<vmem>>, vector<1x16xf32>,
    %17 = vector.extract_strided_slice %14 {offsets = [0, 0], sizes = [1, 16], strides = [1, 1]} : vector<1x128xf32> to vector<1x16xf32>
    %c0_4 = arith.constant 0 : index
    %c16 = arith.constant 16 : index
    %18 = vector.load %arg2[%c0_4, %c16] : memref<1x256xf32, #tpu.memory_space<vmem>>, vector<1x16xf32>
    tpu.vector_store %arg2[%c0_4, %c16], %17 {strides = array<i32>} : memref<1x256xf32, #tpu.memory_space<vmem>>, vector<1x16xf32>,
    %19 = vector.extract_strided_slice %13 {offsets = [0, 16], sizes = [1, 16], strides = [1, 1]} : vector<1x128xf32> to vector<1x16xf32>
    %c0_5 = arith.constant 0 : index
    %c32 = arith.constant 32 : index
    %20 = vector.load %arg2[%c0_5, %c32] : memref<1x256xf32, #tpu.memory_space<vmem>>, vector<1x16xf32>
    tpu.vector_store %arg2[%c0_5, %c32], %19 {strides = array<i32>} : memref<1x256xf32, #tpu.memory_space<vmem>>, vector<1x16xf32>,
    %21 = vector.extract_strided_slice %14 {offsets = [0, 16], sizes = [1, 16], strides = [1, 1]} : vector<1x128xf32> to vector<1x16xf32>
    %c0_6 = arith.constant 0 : index
    %c48 = arith.constant 48 : index
    %22 = vector.load %arg2[%c0_6, %c48] : memref<1x256xf32, #tpu.memory_space<vmem>>, vector<1x16xf32>
    tpu.vector_store %arg2[%c0_6, %c48], %21 {strides = array<i32>} : memref<1x256xf32, #tpu.memory_space<vmem>>, vector<1x16xf32>,
    %23 = vector.extract_strided_slice %13 {offsets = [0, 32], sizes = [1, 16], strides = [1, 1]} : vector<1x128xf32> to vector<1x16xf32>
    %c0_7 = arith.constant 0 : index
    %c64 = arith.constant 64 : index
    %24 = vector.load %arg2[%c0_7, %c64] : memref<1x256xf32, #tpu.memory_space<vmem>>, vector<1x16xf32>
    tpu.vector_store %arg2[%c0_7, %c64], %23 {strides = array<i32>} : memref<1x256xf32, #tpu.memory_space<vmem>>, vector<1x16xf32>,
    %25 = vector.extract_strided_slice %14 {offsets = [0, 32], sizes = [1, 16], strides = [1, 1]} : vector<1x128xf32> to vector<1x16xf32>
    %c0_8 = arith.constant 0 : index
    %c80 = arith.constant 80 : index
    %26 = vector.load %arg2[%c0_8, %c80] : memref<1x256xf32, #tpu.memory_space<vmem>>, vector<1x16xf32>
    tpu.vector_store %arg2[%c0_8, %c80], %25 {strides = array<i32>} : memref<1x256xf32, #tpu.memory_space<vmem>>, vector<1x16xf32>,
    %27 = vector.extract_strided_slice %13 {offsets = [0, 48], sizes = [1, 16], strides = [1, 1]} : vector<1x128xf32> to vector<1x16xf32>
    %c0_9 = arith.constant 0 : index
    %c96 = arith.constant 96 : index
    %28 = vector.load %arg2[%c0_9, %c96] : memref<1x256xf32, #tpu.memory_space<vmem>>, vector<1x16xf32>
    tpu.vector_store %arg2[%c0_9, %c96], %27 {strides = array<i32>} : memref<1x256xf32, #tpu.memory_space<vmem>>, vector<1x16xf32>,
    %29 = vector.extract_strided_slice %14 {offsets = [0, 48], sizes = [1, 16], strides = [1, 1]} : vector<1x128xf32> to vector<1x16xf32>
    %c0_10 = arith.constant 0 : index
    %c112 = arith.constant 112 : index
    %30 = vector.load %arg2[%c0_10, %c112] : memref<1x256xf32, #tpu.memory_space<vmem>>, vector<1x16xf32>
    tpu.vector_store %arg2[%c0_10, %c112], %29 {strides = array<i32>} : memref<1x256xf32, #tpu.memory_space<vmem>>, vector<1x16xf32>,
    %31 = vector.extract_strided_slice %13 {offsets = [0, 64], sizes = [1, 16], strides = [1, 1]} : vector<1x128xf32> to vector<1x16xf32>
    %c0_11 = arith.constant 0 : index
    %c128 = arith.constant 128 : index
    %32 = vector.load %arg2[%c0_11, %c128] : memref<1x256xf32, #tpu.memory_space<vmem>>, vector<1x16xf32>
    tpu.vector_store %arg2[%c0_11, %c128], %31 {strides = array<i32>} : memref<1x256xf32, #tpu.memory_space<vmem>>, vector<1x16xf32>,
    %33 = vector.extract_strided_slice %14 {offsets = [0, 64], sizes = [1, 16], strides = [1, 1]} : vector<1x128xf32> to vector<1x16xf32>
    %c0_12 = arith.constant 0 : index
    %c144 = arith.constant 144 : index
    %34 = vector.load %arg2[%c0_12, %c144] : memref<1x256xf32, #tpu.memory_space<vmem>>, vector<1x16xf32>
    tpu.vector_store %arg2[%c0_12, %c144], %33 {strides = array<i32>} : memref<1x256xf32, #tpu.memory_space<vmem>>, vector<1x16xf32>,
    %35 = vector.extract_strided_slice %13 {offsets = [0, 80], sizes = [1, 16], strides = [1, 1]} : vector<1x128xf32> to vector<1x16xf32>
    %c0_13 = arith.constant 0 : index
    %c160 = arith.constant 160 : index
    %36 = vector.load %arg2[%c0_13, %c160] : memref<1x256xf32, #tpu.memory_space<vmem>>, vector<1x16xf32>
    tpu.vector_store %arg2[%c0_13, %c160], %35 {strides = array<i32>} : memref<1x256xf32, #tpu.memory_space<vmem>>, vector<1x16xf32>,
    %37 = vector.extract_strided_slice %14 {offsets = [0, 80], sizes = [1, 16], strides = [1, 1]} : vector<1x128xf32> to vector<1x16xf32>
    %c0_14 = arith.constant 0 : index
    %c176 = arith.constant 176 : index
    %38 = vector.load %arg2[%c0_14, %c176] : memref<1x256xf32, #tpu.memory_space<vmem>>, vector<1x16xf32>
    tpu.vector_store %arg2[%c0_14, %c176], %37 {strides = array<i32>} : memref<1x256xf32, #tpu.memory_space<vmem>>, vector<1x16xf32>,
    %39 = vector.extract_strided_slice %13 {offsets = [0, 96], sizes = [1, 16], strides = [1, 1]} : vector<1x128xf32> to vector<1x16xf32>
    %c0_15 = arith.constant 0 : index
    %c192 = arith.constant 192 : index
    %40 = vector.load %arg2[%c0_15, %c192] : memref<1x256xf32, #tpu.memory_space<vmem>>, vector<1x16xf32>
    tpu.vector_store %arg2[%c0_15, %c192], %39 {strides = array<i32>} : memref<1x256xf32, #tpu.memory_space<vmem>>, vector<1x16xf32>,
    %41 = vector.extract_strided_slice %14 {offsets = [0, 96], sizes = [1, 16], strides = [1, 1]} : vector<1x128xf32> to vector<1x16xf32>
    %c0_16 = arith.constant 0 : index
    %c208 = arith.constant 208 : index
    %42 = vector.load %arg2[%c0_16, %c208] : memref<1x256xf32, #tpu.memory_space<vmem>>, vector<1x16xf32>
    tpu.vector_store %arg2[%c0_16, %c208], %41 {strides = array<i32>} : memref<1x256xf32, #tpu.memory_space<vmem>>, vector<1x16xf32>,
    %43 = vector.extract_strided_slice %13 {offsets = [0, 112], sizes = [1, 16], strides = [1, 1]} : vector<1x128xf32> to vector<1x16xf32>
    %c0_17 = arith.constant 0 : index
    %c224 = arith.constant 224 : index
    %44 = vector.load %arg2[%c0_17, %c224] : memref<1x256xf32, #tpu.memory_space<vmem>>, vector<1x16xf32>
    tpu.vector_store %arg2[%c0_17, %c224], %43 {strides = array<i32>} : memref<1x256xf32, #tpu.memory_space<vmem>>, vector<1x16xf32>,
    %45 = vector.extract_strided_slice %14 {offsets = [0, 112], sizes = [1, 16], strides = [1, 1]} : vector<1x128xf32> to vector<1x16xf32>
    %c0_18 = arith.constant 0 : index
    %c240 = arith.constant 240 : index
    %46 = vector.load %arg2[%c0_18, %c240] : memref<1x256xf32, #tpu.memory_space<vmem>>, vector<1x16xf32>
    tpu.vector_store %arg2[%c0_18, %c240], %45 {strides = array<i32>} : memref<1x256xf32, #tpu.memory_space<vmem>>, vector<1x16xf32>,
    return
  }
  func.func @transform_0(%arg0: i32) -> (i32, i32) {
    %c0_i32 = arith.constant 0 : i32
    %c0_i32_0 = arith.constant 0 : i32
    %c0_i32_1 = arith.constant 0 : i32
    return %c0_i32, %c0_i32_0 : i32, i32
  }
  func.func @transform_1(%arg0: i32) -> (i32, i32) {
    %c0_i32 = arith.constant 0 : i32
    %c0_i32_0 = arith.constant 0 : i32
    return %arg0, %c0_i32 : i32, i32
  }
}

</mosaic_0001>

<bundles_post_ra>
// kernel: tpu_custom_call.1
= control target key start
LH: loop header
LB: loop body
LE: loop exit
PB: predicated region body
PF: predicated region fallthrough
CT: control target
= control target key end

     0   :  { %6 = vsyncpa [#allocation3], 0  ;;  %s668_s0 = inlined_call_operand.hbm [shape: f32[2,128], index: 0, kind: input, shape index: {}]   ;;  %s669_s1 = inlined_call_operand.hbm [shape: f32[1,256], index: 1, kind: output, shape index: {}]  }
   0x1   :  { %7 = vsyncpa [#allocation4], 0  ;;  %s13_s8 = sshll.u32 %s668_s0, 4  ;;  %s520_s9 = smov [#allocation2]   ;;  %s14_s8 = int_to_ptr.hbm [resolvable:$true] %s13_s8 }
   0x2   :  { %s15_s10 = sshll.u32 %s520_s9, 4  ;;  %s16_s10 = int_to_ptr.vmem [resolvable:$true] %s15_s10 }
   0x3   :  { %18 = dma.hbm_to_vmem [thread:$0]  %s14_s8, 32, %s16_s10, [#allocation3]  }
   0x4   :  { %516 = dma.done.wait [#allocation3], 32  }
   0x5   :  { %517 = vsyncadd [#allocation3], 4294967264  ;;  %v27_v0 = vlaneseq  ;;  %v23_v4 = vld [vmem:[#allocation2] sm:$0x1]  ;;  %v24_v5 = vld [vmem:[#allocation2 + $0x1] sm:$0x1] }
   0x6   :  { %v521_v19 = vmov 683565275   ;;  %v522_v21 = vmov 2475754826   ;;  %v523_v23 = vmov 2131351028  }
   0x7   :  { %v28_v1 = vshrl.u32 %v27_v0, 7  ;;  %v524_v25 = vmov 2102212464   ;;  %v525_v27 = vmov 920167782   ;;  %s528_s0 = smov 64  }
   0x8   :  { %v526_v33 = vmov 1326507024   ;;  %s529_s11 = smov 80   ;;  %s530_s12 = smov 16  }
   0x9   :  { %v29_v2 = vcvt.s32.f32 %v28_v1  ;;  %s531_s13 = smov 32   ;;  %s532_s14 = smov 96  }
   0xa   :  { %s533_s15 = smov 48   ;;  %s534_s16 = smov 112  }
   0xb   :  { %v30_v3 = vmul.f32 8.0, %v29_v2  ;;  %s535_s17 = smov [#allocation5]   ;;  %s436_s21 = sshll.u32 %s669_s1, 4  ;;  %s437_s21 = int_to_ptr.hbm [resolvable:$true] %s436_s21 }
   0xc   :  { %s434_s18 = sshll.u32 %s535_s17, 4  ;;  %s435_s18 = int_to_ptr.vmem [resolvable:$true] %s434_s18 }
   0xd   :  { %v33_v6 = vadd.f32 %v30_v3, %v24_v5 }
   0xf   :  { %v550_v7 = vmul.f32 %v33_v6, %v23_v4 }
  0x11   :  { %v38_v8 = vand.u32 2139095040, %v550_v7  ;;  %v35_v10 = vand.u32 2147483647, %v550_v7  ;;  %vm37_vm12 = vcmp.lt.s32.totalorder %v550_v7, 0 }
  0x13   :  { %v39_v9 = vshrl.u32 %v38_v8, 23  ;;  %v42_v13 = vand.u32 8388607, %v35_v10  ;;  %vm36_vm13 = vcmp.le.f32.partialorder %v35_v10, 0.7853982 }
  0x15   :  { %v446_v11 = vadd.s32 4294967169, %v39_v9  ;;  %v43_v16 = vor.u32 8388608, %v42_v13  ;;  %v527_v9 = vmov 0  }
  0x17   :  { %v45_v12 = vadd.s32 1, %v446_v11  ;;  %v559_v35 = vshll.u32 %v43_v16, 8 }
  0x19   :  { %vm46_vm0 = vcmp.gt.s32.totalorder %v45_v12, 0  ;;  %v84_v47 = vand.u32 65535, %v559_v35  ;;  %v85_v48 = vshrl.u32 %v559_v35, 16 }
  0x1a   :  { %v47_v14 = vsel %vm46_vm0, %v45_v12, 0 }
  0x1b   :  { %v49_v15 = vand.u32 31, %v47_v14  ;;  %v556_v17 = vshrl.u32 %v47_v14, 5 }
  0x1d   :  { %v50_v18 = vsub.s32 32, %v49_v15  ;;  %v52_v20 = vshll.u32 %v521_v19, %v49_v15  ;;  %v55_v22 = vshll.u32 %v522_v21, %v49_v15  ;;  %v58_v24 = vshll.u32 %v523_v23, %v49_v15 }
  0x1e   :  { %v61_v26 = vshll.u32 %v524_v25, %v49_v15  ;;  %v64_v28 = vshll.u32 %v525_v27, %v49_v15  ;;  %vm67_vm1 = vcmp.lt.s32.totalorder %v556_v17, 1  ;;  %vm70_vm2 = vcmp.lt.s32.totalorder %v556_v17, 4 }
  0x1f   :  { %v53_v29 = vshrl.u32 %v522_v21, %v50_v18  ;;  %v56_v30 = vshrl.u32 %v523_v23, %v50_v18  ;;  %v59_v31 = vshrl.u32 %v524_v25, %v50_v18  ;;  %v62_v32 = vshrl.u32 %v525_v27, %v50_v18 }
  0x20   :  { %v65_v34 = vshrl.u32 %v526_v33, %v50_v18  ;;  %vm69_vm3 = vcmp.lt.s32.totalorder %v556_v17, 3  ;;  %vm68_vm4 = vcmp.lt.s32.totalorder %v556_v17, 2  ;;  %v51_v55 = vshrl.u32 %v521_v19, %v50_v18 }
  0x21   :  { %v54_v36 = vor.u32 %v53_v29, %v52_v20  ;;  %v57_v37 = vor.u32 %v56_v30, %v55_v22  ;;  %v60_v38 = vor.u32 %v59_v31, %v58_v24  ;;  %v63_v39 = vor.u32 %v62_v32, %v61_v26 }
  0x22   :  { %v66_v40 = vor.u32 %v65_v34, %v64_v28 }
  0x23   :  { %v75_v41 = vsel %vm67_vm1, %v54_v36, %v57_v37  ;;  %v79_v42 = vsel %vm67_vm1, %v57_v37, %v60_v38  ;;  %v76_v43 = vsel %vm70_vm2, %v63_v39, 920167782  ;;  %v71_v5 = vsel %vm67_vm1, %v51_v55, %v54_v36 }
  0x24   :  { %v80_v44 = vsel %vm70_vm2, %v66_v40, 1326507024  ;;  %v77_v45 = vsel %vm69_vm3, %v60_v38, %v76_v43  ;;  %v72_v8 = vsel %vm70_vm2, %v60_v38, 2102212464 }
  0x25   :  { %v81_v46 = vsel %vm69_vm3, %v63_v39, %v80_v44  ;;  %v78_v49 = vsel %vm68_vm4, %v75_v41, %v77_v45  ;;  %v73_v20 = vsel %vm69_vm3, %v57_v37, %v72_v8 }
  0x26   :  { %v82_v50 = vsel %vm68_vm4, %v79_v42, %v81_v46  ;;  %v108_v53 = vand.u32 65535, %v78_v49  ;;  %v109_v54 = vshrl.u32 %v78_v49, 16  ;;  %v74_v28 = vsel %vm68_vm4, %v71_v5, %v73_v20 }
  0x27   :  { %v86_v51 = vand.u32 65535, %v82_v50  ;;  %v87_v52 = vshrl.u32 %v82_v50, 16  ;;  %v128_v32 = vmul.u32 %v559_v35, %v74_v28  ;;  %vm178_vm4 = vweird.f32 %v550_v7 }
  0x28   :  { %v110_v59 = vmul.u32 %v108_v53, %v84_v47  ;;  %v111_v60 = vmul.u32 %v109_v54, %v84_v47  ;;  %v112_v61 = vmul.u32 %v108_v53, %v85_v48  ;;  %v113_v2 = vmul.u32 %v109_v54, %v85_v48 }
  0x29   :  { %v88_v56 = vmul.u32 %v86_v51, %v84_v47  ;;  %v89_v57 = vmul.u32 %v87_v52, %v84_v47  ;;  %v90_v58 = vmul.u32 %v86_v51, %v85_v48  ;;  %v91_v62 = vmul.u32 %v87_v52, %v85_v48 }
  0x2a   :  { %v114_v3 = vshll.u32 %v111_v60, 16  ;;  %v116_v4 = vshll.u32 %v112_v61, 16  ;;  %v115_v18 = vshrl.u32 %v111_v60, 16  ;;  %v117_v24 = vshrl.u32 %v112_v61, 16 }
  0x2b   :  { %v92_v63 = vshll.u32 %v89_v57, 16  ;;  %v94_v1 = vshll.u32 %v90_v58, 16  ;;  %v93_v13 = vshrl.u32 %v89_v57, 16  ;;  %v95_v21 = vshrl.u32 %v90_v58, 16 }
  0x2c   :  { %vm118_vm6 = vc.u32 %v110_v59, %v114_v3  ;;  %v120_v12 = vadd.s32 %v114_v3, %v110_v59 }
  0x2d   :  { %vm96_vm5 = vc.u32 %v88_v56, %v92_v63  ;;  %v98_v6 = vadd.s32 %v92_v63, %v88_v56  ;;  %v119_v15 = vsel %vm118_vm6, 1, %v527_v9  ;;  %vm613_vm6 = vcmp.ge.s32.totalorder %v27_v0, 16 }
  0x2e   :  { %v97_v11 = vsel %vm96_vm5, 1, %v527_v9  ;;  %v121_v19 = vadd.s32 %v119_v15, %v113_v2  ;;  %vm122_vm8 = vc.u32 %v120_v12, %v116_v4  ;;  %v124_v27 = vadd.s32 %v120_v12, %v116_v4 }
  0x2f   :  { %v99_v14 = vadd.s32 %v97_v11, %v91_v62  ;;  %vm100_vm7 = vc.u32 %v98_v6, %v94_v1  ;;  %v123_v23 = vsel %vm122_vm8, 1, %v527_v9  ;;  %vm600_vm5 = vcmp.lt.s32.totalorder %v27_v0, 16 }
  0x30   :  { %v101_v16 = vsel %vm100_vm7, 1, %v527_v9  ;;  %v125_v25 = vadd.s32 %v123_v23, %v121_v19  ;;  %vm618_vm7 = vcmp.lt.s32.totalorder %v27_v0, 32  ;;  %vm623_vm8 = vcmp.ge.s32.totalorder %v27_v0, 32 }
  0x31   :  { %v103_v22 = vadd.s32 %v101_v16, %v99_v14 }
  0x32   :  { %v126_v29 = vadd.s32 %v125_v25, %v115_v18 }
  0x33   :  { %v104_v26 = vadd.s32 %v103_v22, %v93_v13 }
  0x34   :  { %v127_v31 = vadd.s32 %v126_v29, %v117_v24 }
  0x35   :  { %v105_v30 = vadd.s32 %v104_v26, %v95_v21 }
  0x36   :  { %v131_v33 = vadd.s32 1, %v127_v31 }
  0x37   :  { %vm130_vm9 = vc.u32 %v105_v30, %v124_v27  ;;  %v129_v17 = vadd.s32 %v124_v27, %v105_v30 }
  0x38   :  { %v132_v34 = vsel %vm130_vm9, %v131_v33, %v127_v31  ;;  %vm628_vm9 = vcmp.lt.s32.totalorder %v27_v0, 48 }
  0x39   :  { %v133_v36 = vadd.s32 %v132_v34, %v128_v32 }
  0x3b   :  { %v134_v37 = vadd.s32 536870912, %v133_v36 }
  0x3d   :  { %v135_v38 = vshrl.u32 %v134_v37, 30 }
  0x3f   :  { %v136_v39 = vshll.u32 %v135_v38, 30  ;;  %v159_v56 = vsub.s32 4, %v135_v38 }
  0x41   :  { %v137_v40 = vsub.s32 %v133_v36, %v136_v39  ;;  %v160_v59 = vsel %vm37_vm12, %v159_v56, %v135_v38 }
  0x42   :  { %v162_v62 = vsel %vm36_vm13, 0, %v160_v59 }
  0x43   :  { %vm138_vm10 = vcmp.lt.s32.totalorder %v137_v40, 0  ;;  %v139_v41 = vsub.s32 0, %v137_v40  ;;  %v179_v4 = vadd.s32 3, %v162_v62  ;;  %v334_v12 = vand.u32 3, %v162_v62 }
  0x45   :  { %v140_v42 = vsel %vm138_vm10, %v139_v41, %v137_v40  ;;  %v180_v11 = vand.u32 3, %v179_v4  ;;  %vm339_vm15 = vcmp.eq.s32.totalorder %v334_v12, 2  ;;  %vm336_vm2 = vcmp.eq.s32.totalorder %v334_v12, 0  ;;  %vm355_vm10 = vmand %vm613_vm6, %vm618_vm7 }
  0x46   :  { %v141_v43 = vclz %v140_v42  ;;  %vm335_vm3 = vcmp.lt.s32.totalorder %v334_v12, 2 }
  0x47   :  { %vm185_vm14 = vcmp.eq.s32.totalorder %v180_v11, 2  ;;  %vm181_vm0 = vcmp.lt.s32.totalorder %v180_v11, 2  ;;  %vm182_vm1 = vcmp.eq.s32.totalorder %v180_v11, 0 }
  0x48   :  { %v447_v44 = vadd.s32 4294967294, %v141_v43 }
  0x4a   :  { %vm448_vm11 = vcmp.lt.s32.totalorder %v447_v44, 0 }
  0x4b   :  { %v144_v45 = vsel %vm448_vm11, 0, %v447_v44  ;;  %vm363_vm11 = vmand %vm623_vm8, %vm628_vm9  ;;  %vm396_vm8 = vcmp.ge.s32.totalorder %v27_v0, 112  ;;  %vm397_vm9 = vcmp.lt.s32.totalorder %v27_v0, 128 }
  0x4c   :  { %v145_v46 = vsub.s32 32, %v144_v45  ;;  %v146_v47 = vshll.u32 %v137_v40, %v144_v45  ;;  %v149_v48 = vsub.s32 4294967266, %v144_v45 }
  0x4e   :  { %v147_v35 = vshrl.u32 %v129_v17, %v145_v46  ;;  %v150_v49 = vadd.s32 127, %v149_v48 }
  0x50   :  { %v148_v50 = vor.u32 %v147_v35, %v146_v47  ;;  %v151_v51 = vshll.u32 %v150_v49, 23 }
  0x52   :  { %v152_v52 = vor.u32 4788187, %v151_v51  ;;  %v155_v53 = vcvt.s32.f32 %v148_v50 }
  0x54   :  { %v153_v54 = vand.u32 2147483647, %v152_v52 }
  0x56   :  { %v156_v55 = vmul.f32 %v155_v53, %v153_v54 }
  0x58   :  { %v157_v57 = vxor.u32 2147483648, %v156_v55 }
  0x5a   :  { %v158_v58 = vsel %vm37_vm12, %v157_v57, %v156_v55  ;;  %vm368_vm12 = vcmp.ge.s32.totalorder %v27_v0, 48 }
  0x5b   :  { %v161_v60 = vsel %vm36_vm13, %v550_v7, %v158_v58  ;;  %vm369_vm13 = vcmp.lt.s32.totalorder %v27_v0, 64 }
  0x5c   :  { %v163_v61 = vmul.f32 %v161_v60, %v161_v60 }
  0x5e   :  { %v164_v63 = vmul.f32 -0.001358992, %v163_v61  ;;  %v171_v1 = vmul.f32 -0.00019511016, %v163_v61 }
  0x60   :  { %v165_v2 = vadd.f32 0.041655596, %v164_v63  ;;  %v172_v3 = vadd.f32 0.008332121, %v171_v1 }
  0x62   :  { %v166_v5 = vmul.f32 %v165_v2, %v163_v61  ;;  %v173_v6 = vmul.f32 %v172_v3, %v163_v61 }
  0x64   :  { %v167_v8 = vadd.f32 -0.4999988, %v166_v5  ;;  %v174_v9 = vadd.f32 -0.16666654, %v173_v6 }
  0x66   :  { %v168_v13 = vmul.f32 %v167_v8, %v163_v61  ;;  %v175_v10 = vmul.f32 %v174_v9, %v163_v61 }
  0x68   :  { %v169_v14 = vadd.f32 1.0, %v168_v13  ;;  %v176_v15 = vadd.f32 1.0, %v175_v10 }
  0x6a   :  { %v177_v16 = vmul.f32 %v176_v15, %v161_v60  ;;  %v186_v18 = vxor.u32 2147483648, %v169_v14 }
  0x6c   :  { %v183_v19 = vxor.u32 2147483648, %v177_v16  ;;  %v187_v20 = vsel %vm185_vm14, %v186_v18, %v177_v16  ;;  %v341_v21 = vsel %vm339_vm15, %v186_v18, %v177_v16  ;;  %vm370_vm14 = vmand %vm368_vm12, %vm369_vm13  ;;  %vm375_vm15 = vcmp.ge.s32.totalorder %v27_v0, 64 }
  0x6e   :  { %v184_v22 = vsel %vm182_vm1, %v169_v14, %v183_v19  ;;  %v338_v23 = vsel %vm336_vm2, %v169_v14, %v183_v19  ;;  %vm382_vm2 = vcmp.ge.s32.totalorder %v27_v0, 80 }
  0x6f   :  { %v188_v24 = vsel %vm181_vm0, %v184_v22, %v187_v20  ;;  %v342_v25 = vsel %vm335_vm3, %v338_v23, %v341_v21  ;;  %vm376_vm0 = vcmp.lt.s32.totalorder %v27_v0, 80  ;;  %vm383_vm3 = vcmp.lt.s32.totalorder %v27_v0, 96 }
  0x70   :  { %v189_v26 = vsel %vm178_vm4, nan, %v188_v24  ;;  %v596_v27 = vsel %vm178_vm4, nan, %v342_v25  ;;  %vm377_vm1 = vmand %vm375_vm15, %vm376_vm0  ;;  %vm649_vm4 = vcmp.ge.s32.totalorder %v27_v0, 96 }
  0x71   :  { %400 = vrot.lane.b32.xlu0 %v189_v26, %s528_s0  ;;  %404 = vrot.lane.b32.xlu1 %v596_v27, %s529_s11  ;;  %348 = vst.msk [vmem:[#allocation5] sm:$0x1] %vm600_vm5, %v189_v26  ;;  %vm384_vm6 = vmand %vm382_vm2, %vm383_vm3 }
  0x72   :  { %408 = vrot.lane.b32.xlu2 %v189_v26, %s529_s11 }
  0x79   :  { %350 = vrot.lane.b32.xlu0 %v596_v27, %s530_s12  ;;  %358 = vrot.lane.b32.xlu1 %v189_v26, %s530_s12 }
  0x7a   :  { %365 = vrot.lane.b32.xlu2 %v596_v27, %s531_s13 }
  0x81   :  { %412 = vrot.lane.b32.xlu0 %v596_v27, %s532_s14  ;;  %372 = vrot.lane.b32.xlu1 %v189_v26, %s531_s13 }
  0x82   :  { %416 = vrot.lane.b32.xlu2 %v189_v26, %s532_s14 }
  0x89   :  { %379 = vrot.lane.b32.xlu0 %v596_v27, %s533_s15  ;;  %420 = vrot.lane.b32.xlu1 %v596_v27, %s534_s16 }
  0x8a   :  { %386 = vrot.lane.b32.xlu2 %v189_v26, %s533_s15 }
  0x91   :  { %424 = vrot.lane.b32.xlu0 %v189_v26, %s534_s16  ;;  %393 = vrot.lane.b32.xlu1 %v596_v27, %s528_s0 }
  0xcc   :  { %v409_v7 = vpop.permute.xlu2 %408 }
  0xd4   :  { %v366_v36 = vpop.permute.xlu2 %365 }
  0xdc   :  { %v417_v39 = vpop.permute.xlu2 %416 }
  0xe3   :  { %v401_v33 = vpop.permute.xlu0 %400  ;;  %v405_v34 = vpop.permute.xlu1 %404 }
  0xe4   :  { %403 = vst.msk [vmem:[#allocation5 + $0x1] sm:$0x1] %vm600_vm5, %v401_v33  ;;  %vm654_vm5 = vcmp.lt.s32.totalorder %v27_v0, 112  ;;  %v387_v44 = vpop.permute.xlu2 %386 }
  0xe5   :  { %407 = vst.msk [vmem:[#allocation5 + $0x1] sm:$0x1] %vm355_vm10, %v405_v34  ;;  %vm391_vm7 = vmand %vm649_vm4, %vm654_vm5 }
  0xe6   :  { %411 = vst.msk [vmem:[#allocation5 + $0x1] sm:$0x1] %vm363_vm11, %v409_v7 }
  0xeb   :  { %v351_v37 = vpop.permute.xlu0 %350  ;;  %v359_v38 = vpop.permute.xlu1 %358 }
  0xec   :  { %356 = vst.msk [vmem:[#allocation5] sm:$0x1] %vm355_vm10, %v351_v37  ;;  %vm398_vm10 = vmand %vm396_vm8, %vm397_vm9 }
  0xed   :  { %364 = vst.msk [vmem:[#allocation5] sm:$0x1] %vm363_vm11, %v359_v38 }
  0xee   :  { %371 = vst.msk [vmem:[#allocation5] sm:$0x1] %vm370_vm14, %v366_v36 }
  0xf3   :  { %v413_v40 = vpop.permute.xlu0 %412  ;;  %v373_v41 = vpop.permute.xlu1 %372 }
  0xf4   :  { %415 = vst.msk [vmem:[#allocation5 + $0x1] sm:$0x1] %vm370_vm14, %v413_v40 }
  0xf5   :  { %378 = vst.msk [vmem:[#allocation5] sm:$0x1] %vm377_vm1, %v373_v41 }
  0xf6   :  { %419 = vst.msk [vmem:[#allocation5 + $0x1] sm:$0x1] %vm377_vm1, %v417_v39 }
  0xfb   :  { %v380_v17 = vpop.permute.xlu0 %379  ;;  %v421_v45 = vpop.permute.xlu1 %420 }
  0xfc   :  { %385 = vst.msk [vmem:[#allocation5] sm:$0x1] %vm384_vm6, %v380_v17 }
  0xfd   :  { %423 = vst.msk [vmem:[#allocation5 + $0x1] sm:$0x1] %vm384_vm6, %v421_v45 }
  0xfe   :  { %392 = vst.msk [vmem:[#allocation5] sm:$0x1] %vm391_vm7, %v387_v44 }
 0x103   :  { %v425_v46 = vpop.permute.xlu0 %424  ;;  %v394_v47 = vpop.permute.xlu1 %393 }
 0x104   :  { %427 = vst.msk [vmem:[#allocation5 + $0x1] sm:$0x1] %vm391_vm7, %v425_v46 }
 0x105   :  { %399 = vst.msk [vmem:[#allocation5] sm:$0x1] %vm398_vm10, %v394_v47 }
 0x106   :  { %428 = vst.msk [vmem:[#allocation5 + $0x1] sm:$0x1] %vm398_vm10, %v596_v27 }
 0x107   :  { %439 = dma.vmem_to_hbm [thread:$0]  %s435_s18, 32, %s437_s21, [#allocation4]  }
 0x108   :  { %518 = dma.done.wait [#allocation4], 32  }
 0x109   :  { %519 = vsyncadd [#allocation4], 4294967264 }
 0x10a   :  { %444 = vsyncpa [#allocation3], 1 }
 0x10b   :  { %445 = vsyncpa [#allocation4], 1 }

</bundles_post_ra>
